<compile_context>
chip_gen: v5e
topology: v5e:2x2
jax: 0.10.0
libtpu: 0.0.40
codegen_flags: <defaults>
</compile_context>

<pallas_src>
import jax
import jax.numpy as jnp
import numpy as np
from jax.experimental import pallas as pl
from jax.experimental.pallas import tpu as pltpu

BN_EPS = 1e-5
# Tile of the pixel axis. Sized so double-buffered (x, out) tiles stay far
# under v7x's 32 MiB scoped / 64 MiB physical VMEM at these channel counts.
_MAX_TILE_M = 2048


def _make_root_kernel(num_inputs, m_actual):
    """Builds the kernel for `num_inputs` concatenated feature maps."""
    inv_m = 1.0 / float(m_actual)  # real (unpadded) pixel count

    def kernel(*refs):
        x_refs = refs[:num_inputs]                       # each (C_i, TM)
        w_refs = refs[num_inputs:2 * num_inputs]         # each (Cout, C_i)
        gamma_ref = refs[2 * num_inputs]                 # (Cout, 1)
        beta_ref = refs[2 * num_inputs + 1]              # (Cout, 1)
        o_ref = refs[2 * num_inputs + 2]                 # (Cout, TM)
        sum_ref = refs[2 * num_inputs + 3]               # (Cout, 1) scratch
        ssq_ref = refs[2 * num_inputs + 4]               # (Cout, 1) scratch

        phase = pl.program_id(0)
        m_idx = pl.program_id(1)

        # 1x1 conv == (Cout, Cin) @ (Cin, TM); the Cin split over the xs list
        # becomes accumulated partial dots (HBM concat eliminated).
        y = jnp.dot(w_refs[0][...], x_refs[0][...],
                    preferred_element_type=jnp.float32)
        for w_r, x_r in zip(w_refs[1:], x_refs[1:]):
            y = y + jnp.dot(w_r[...], x_r[...],
                            preferred_element_type=jnp.float32)

        # ---- phase 0: accumulate batch statistics across M tiles ----------
        @pl.when(jnp.logical_and(phase == 0, m_idx == 0))
        def _():
            sum_ref[...] = jnp.zeros_like(sum_ref)
            ssq_ref[...] = jnp.zeros_like(ssq_ref)

        @pl.when(phase == 0)
        def _():
            # Zero-padded pixel columns contribute 0 to both sums, and we
            # divide by the real M, so padding never pollutes the stats.
            sum_ref[...] += jnp.sum(y, axis=1, keepdims=True)
            ssq_ref[...] += jnp.sum(y * y, axis=1, keepdims=True)

        # ---- phase 1: normalize + scale/shift + ReLU, lane-dense store -----
        @pl.when(phase == 1)
        def _():
            mean = sum_ref[...] * inv_m                         # (Cout, 1)
            var = ssq_ref[...] * inv_m - mean * mean            # biased (training)
            scale = jax.lax.rsqrt(var + BN_EPS) * gamma_ref[...]
            out = (y - mean) * scale + beta_ref[...]
            o_ref[...] = jnp.maximum(out, 0.0).astype(o_ref.dtype)

    return kernel


def root_forward(xs, conv_weight, gamma, beta):
    """xs: list of NCHW arrays (same N,H,W). conv_weight: (Cout, Cin, 1, 1)."""
    xs = [jnp.asarray(x) for x in xs]
    N, _, H, W = xs[0].shape
    cs = [int(x.shape[1]) for x in xs]
    Cout = int(conv_weight.shape[0])
    M = N * H * W

    # Channel-major / pixel-minor layout: only the cheap N<->C swap (N is
    # small), no full NHWC transpose and no HBM concat.
    xs_cm = [
        jnp.transpose(x, (1, 0, 2, 3)).reshape(c, M).astype(jnp.float32)
        for x, c in zip(xs, cs)
    ]

    # Pick the M tile (multiple of 128) and zero-pad M to a multiple of it.
    if M <= _MAX_TILE_M:
        tile_m = -(-M // 128) * 128
    else:
        tile_m = _MAX_TILE_M
    m_pad = -(-M // tile_m) * tile_m
    if m_pad != M:
        xs_cm = [jnp.pad(x, ((0, 0), (0, m_pad - M))) for x in xs_cm]
    nm = m_pad // tile_m

    # Per-input slices of the 1x1 conv weight: (Cout, C_i)
    w2d = conv_weight[:, :, 0, 0].astype(jnp.float32)
    offs = np.cumsum([0] + cs)
    ws = [w2d[:, int(offs[i]):int(offs[i + 1])] for i in range(len(cs))]

    g = gamma.reshape(Cout, 1).astype(jnp.float32)
    b = beta.reshape(Cout, 1).astype(jnp.float32)

    kernel = _make_root_kernel(len(xs), M)

    grid = (2, nm)  # (phase, m_tile); phase 0 = stats, phase 1 = normalize
    in_specs = (
        [pl.BlockSpec((c, tile_m), lambda p, m: (0, m)) for c in cs]      # xs
        + [pl.BlockSpec((Cout, c), lambda p, m: (0, 0)) for c in cs]      # ws
        + [pl.BlockSpec((Cout, 1), lambda p, m: (0, 0)),                  # gamma
           pl.BlockSpec((Cout, 1), lambda p, m: (0, 0))]                  # beta
    )
    # Phase 0 never writes the output: pin its block index at 0 so no garbage
    # writeback ever happens; phase 1 streams lane-dense (Cout, TM) tiles.
    out_specs = pl.BlockSpec((Cout, tile_m), lambda p, m: (0, m * p))

    out_cm = pl.pallas_call(
        kernel,
        out_shape=jax.ShapeDtypeStruct((Cout, m_pad), jnp.float32),
        grid_spec=pltpu.PrefetchScalarGridSpec(
            num_scalar_prefetch=0,
            grid=grid,
            in_specs=in_specs,
            out_specs=out_specs,
            scratch_shapes=[
                pltpu.VMEM((Cout, 1), jnp.float32),   # sum(y)
                pltpu.VMEM((Cout, 1), jnp.float32),   # sum(y^2)
            ],
        ),
        compiler_params=pltpu.CompilerParams(
            # Both axes "arbitrary": phase 1 depends on the phase-0
            # accumulators and the M axis carries the stats accumulator.
            # TODO(synk): per-core partial stats + combine to use both v7x TCs.
            dimension_semantics=("arbitrary", "arbitrary"),
        ),
    )(*xs_cm, *ws, g, b)

    # Back to NCHW: slice off padding, then the cheap C<->N swap.
    out = out_cm[:, :M].reshape(Cout, N, H, W).transpose(1, 0, 2, 3)
    return out


def _reference(xs, conv_weight, gamma, beta):
    # pure-JAX reference replicating torch semantics (1x1 conv, training BN, ReLU)
    x = jnp.concatenate(xs, axis=1)
    Cout = conv_weight.shape[0]
    w2d = conv_weight[:, :, 0, 0]                      # (Cout, Cin)
    y = jnp.einsum("nchw,oc->nohw", x, w2d)            # 1x1 conv, no bias
    mean = jnp.mean(y, axis=(0, 2, 3), keepdims=True)
    var = jnp.mean((y - mean) ** 2, axis=(0, 2, 3), keepdims=True)
    y_hat = (y - mean) / jnp.sqrt(var + BN_EPS)
    out = y_hat * gamma.reshape(1, Cout, 1, 1) + beta.reshape(1, Cout, 1, 1)
    return jnp.maximum(out, 0.0)


if __name__ == "__main__":
    key = jax.random.PRNGKey(0)
    k1, k2, k3 = jax.random.split(key, 3)

    # Root(in_channels=8, out_channels=16, kernel_size=1); xs = two (2,4,16,16)
    N, H, W = 2, 16, 16
    C1, C2 = 4, 4
    Cin, Cout = C1 + C2, 16

    x1 = jax.random.normal(k1, (N, C1, H, W), dtype=jnp.float32)
    x2 = jax.random.normal(k2, (N, C2, H, W), dtype=jnp.float32)

    # deterministic parameter init (PyTorch-style: BN gamma=1, beta=0)
    conv_weight = 0.1 * jax.random.normal(k3, (Cout, Cin, 1, 1), dtype=jnp.float32)
    gamma = jnp.ones((Cout,), dtype=jnp.float32)
    beta = jnp.zeros((Cout,), dtype=jnp.float32)

    out = root_forward([x1, x2], conv_weight, gamma, beta)
    out = jax.block_until_ready(out)

    ref = _reference([x1, x2], conv_weight, gamma, beta)
    assert out.shape == (N, Cout, H, W)
    assert np.allclose(np.asarray(out), np.asarray(ref), atol=1e-4, rtol=1e-4)

    print("KERNEL_OK")
</pallas_src>

<mosaic_0001>
module attributes {stable_mosaic.version = 11 : i64} {
  func.func @kernel(%arg0: i32, %arg1: i32, %arg2: memref<4x512xf32, #tpu.memory_space<vmem>>, %arg3: memref<4x512xf32, #tpu.memory_space<vmem>>, %arg4: memref<16x4xf32, #tpu.memory_space<vmem>>, %arg5: memref<16x4xf32, #tpu.memory_space<vmem>>, %arg6: memref<16x1xf32, #tpu.memory_space<vmem>>, %arg7: memref<16x1xf32, #tpu.memory_space<vmem>>, %arg8: memref<16x512xf32, #tpu.memory_space<vmem>>, %arg9: memref<16x1xf32, #tpu.memory_space<vmem>>, %arg10: memref<16x1xf32, #tpu.memory_space<vmem>>) attributes {dimension_semantics = [#tpu.dimension_semantics<arbitrary>, #tpu.dimension_semantics<arbitrary>], iteration_bounds = array<i64: 2, 1>, scalar_prefetch = 0 : i64, scratch_operands = 2 : i64, tpu.core_type = #tpu.core_type<tc>, window_params = [{transform_indices = @transform_0, window_bounds = array<i64: 4, 512>}, {transform_indices = @transform_1, window_bounds = array<i64: 4, 512>}, {pipeline_mode = #tpu.pipeline_mode<synchronous>, transform_indices = @transform_2, window_bounds = array<i64: 16, 4>}, {pipeline_mode = #tpu.pipeline_mode<synchronous>, transform_indices = @transform_3, window_bounds = array<i64: 16, 4>}, {pipeline_mode = #tpu.pipeline_mode<synchronous>, transform_indices = @transform_4, window_bounds = array<i64: 16, 1>}, {pipeline_mode = #tpu.pipeline_mode<synchronous>, transform_indices = @transform_5, window_bounds = array<i64: 16, 1>}, {transform_indices = @transform_6, window_bounds = array<i64: 16, 512>}]} {
    %c0 = arith.constant 0 : index
    %c0_0 = arith.constant 0 : index
    %0 = vector.load %arg4[%c0, %c0_0] : memref<16x4xf32, #tpu.memory_space<vmem>>, vector<16x4xf32>
    %c0_1 = arith.constant 0 : index
    %c0_2 = arith.constant 0 : index
    %1 = vector.load %arg2[%c0_1, %c0_2] : memref<4x512xf32, #tpu.memory_space<vmem>>, vector<4x512xf32>
    %cst = arith.constant dense<0.000000e+00> : vector<16x512xf32>
    %2 = tpu.matmul %0, %1, %cst {dimension_numbers = #tpu.dot_dimension_numbers<[1], [0], [0], [1], [0, 0, 1, 1], [], []>} : vector<16x4xf32>, vector<4x512xf32>, vector<16x512xf32> -> vector<16x512xf32>
    %c0_3 = arith.constant 0 : index
    %c0_4 = arith.constant 0 : index
    %3 = vector.load %arg5[%c0_3, %c0_4] : memref<16x4xf32, #tpu.memory_space<vmem>>, vector<16x4xf32>
    %c0_5 = arith.constant 0 : index
    %c0_6 = arith.constant 0 : index
    %4 = vector.load %arg3[%c0_5, %c0_6] : memref<4x512xf32, #tpu.memory_space<vmem>>, vector<4x512xf32>
    %cst_7 = arith.constant dense<0.000000e+00> : vector<16x512xf32>
    %5 = tpu.matmul %3, %4, %cst_7 {dimension_numbers = #tpu.dot_dimension_numbers<[1], [0], [0], [1], [0, 0, 1, 1], [], []>} : vector<16x4xf32>, vector<4x512xf32>, vector<16x512xf32> -> vector<16x512xf32>
    %6 = arith.addf %2, %5 : vector<16x512xf32>
    %c0_i32 = arith.constant 0 : i32
    %7 = arith.cmpi eq, %arg0, %c0_i32 : i32
    %c0_i32_8 = arith.constant 0 : i32
    %8 = arith.cmpi eq, %arg1, %c0_i32_8 : i32
    %9 = arith.andi %7, %8 : i1
    %10 = arith.extui %9 : i1 to i32
    %c0_i32_9 = arith.constant 0 : i32
    %11 = arith.cmpi ne, %10, %c0_i32_9 : i32
    scf.if %11 {
      %cst_13 = arith.constant 0.000000e+00 : f32
      %18 = vector.broadcast %cst_13 : f32 to vector<16x1xf32>
      %c0_14 = arith.constant 0 : index
      %c0_15 = arith.constant 0 : index
      %19 = vector.load %arg9[%c0_14, %c0_15] : memref<16x1xf32, #tpu.memory_space<vmem>>, vector<16x1xf32>
      tpu.vector_store %arg9[%c0_14, %c0_15], %18 {strides = array<i32>} : memref<16x1xf32, #tpu.memory_space<vmem>>, vector<16x1xf32>,
      %cst_16 = arith.constant 0.000000e+00 : f32
      %20 = vector.broadcast %cst_16 : f32 to vector<16x1xf32>
      %c0_17 = arith.constant 0 : index
      %c0_18 = arith.constant 0 : index
      %21 = vector.load %arg10[%c0_17, %c0_18] : memref<16x1xf32, #tpu.memory_space<vmem>>, vector<16x1xf32>
      tpu.vector_store %arg10[%c0_17, %c0_18], %20 {strides = array<i32>} : memref<16x1xf32, #tpu.memory_space<vmem>>, vector<16x1xf32>,
    } else {
    }
    %c0_i32_10 = arith.constant 0 : i32
    %12 = arith.cmpi eq, %arg0, %c0_i32_10 : i32
    %13 = arith.extui %12 : i1 to i32
    %c0_i32_11 = arith.constant 0 : i32
    %14 = arith.cmpi ne, %13, %c0_i32_11 : i32
    scf.if %14 {
      %c0_13 = arith.constant 0 : index
      %c0_14 = arith.constant 0 : index
      %18 = vector.load %arg9[%c0_13, %c0_14] : memref<16x1xf32, #tpu.memory_space<vmem>>, vector<16x1xf32>
      %cst_15 = arith.constant dense<0.000000e+00> : vector<16xf32>
      %19 = vector.multi_reduction <add>, %6, %cst_15 [1] : vector<16x512xf32> to vector<16xf32>
      %20 = vector.shape_cast %19 : vector<16xf32> to vector<16x1xf32>
      %21 = arith.addf %18, %20 : vector<16x1xf32>
      %c0_16 = arith.constant 0 : index
      %c0_17 = arith.constant 0 : index
      %22 = vector.load %arg9[%c0_16, %c0_17] : memref<16x1xf32, #tpu.memory_space<vmem>>, vector<16x1xf32>
      tpu.vector_store %arg9[%c0_16, %c0_17], %21 {strides = array<i32>} : memref<16x1xf32, #tpu.memory_space<vmem>>, vector<16x1xf32>,
      %c0_18 = arith.constant 0 : index
      %c0_19 = arith.constant 0 : index
      %23 = vector.load %arg10[%c0_18, %c0_19] : memref<16x1xf32, #tpu.memory_space<vmem>>, vector<16x1xf32>
      %24 = arith.mulf %6, %6 : vector<16x512xf32>
      %cst_20 = arith.constant dense<0.000000e+00> : vector<16xf32>
      %25 = vector.multi_reduction <add>, %24, %cst_20 [1] : vector<16x512xf32> to vector<16xf32>
      %26 = vector.shape_cast %25 : vector<16xf32> to vector<16x1xf32>
      %27 = arith.addf %23, %26 : vector<16x1xf32>
      %c0_21 = arith.constant 0 : index
      %c0_22 = arith.constant 0 : index
      %28 = vector.load %arg10[%c0_21, %c0_22] : memref<16x1xf32, #tpu.memory_space<vmem>>, vector<16x1xf32>
      tpu.vector_store %arg10[%c0_21, %c0_22], %27 {strides = array<i32>} : memref<16x1xf32, #tpu.memory_space<vmem>>, vector<16x1xf32>,
    } else {
    }
    %c1_i32 = arith.constant 1 : i32
    %15 = arith.cmpi eq, %arg0, %c1_i32 : i32
    %16 = arith.extui %15 : i1 to i32
    %c0_i32_12 = arith.constant 0 : i32
    %17 = arith.cmpi ne, %16, %c0_i32_12 : i32
    scf.if %17 {
      %c0_13 = arith.constant 0 : index
      %c0_14 = arith.constant 0 : index
      %18 = vector.load %arg9[%c0_13, %c0_14] : memref<16x1xf32, #tpu.memory_space<vmem>>, vector<16x1xf32>
      %cst_15 = arith.constant 0.001953125 : f32
      %19 = vector.broadcast %cst_15 : f32 to vector<16x1xf32>
      %20 = arith.mulf %18, %19 : vector<16x1xf32>
      %c0_16 = arith.constant 0 : index
      %c0_17 = arith.constant 0 : index
      %21 = vector.load %arg10[%c0_16, %c0_17] : memref<16x1xf32, #tpu.memory_space<vmem>>, vector<16x1xf32>
      %cst_18 = arith.constant 0.001953125 : f32
      %22 = vector.broadcast %cst_18 : f32 to vector<16x1xf32>
      %23 = arith.mulf %21, %22 : vector<16x1xf32>
      %24 = arith.mulf %20, %20 : vector<16x1xf32>
      %25 = arith.subf %23, %24 : vector<16x1xf32>
      %cst_19 = arith.constant 9.99999974E-6 : f32
      %26 = vector.broadcast %cst_19 : f32 to vector<16x1xf32>
      %27 = arith.addf %25, %26 : vector<16x1xf32>
      %28 = math.rsqrt %27 : vector<16x1xf32>
      %c0_20 = arith.constant 0 : index
      %c0_21 = arith.constant 0 : index
      %29 = vector.load %arg6[%c0_20, %c0_21] : memref<16x1xf32, #tpu.memory_space<vmem>>, vector<16x1xf32>
      %30 = arith.mulf %28, %29 : vector<16x1xf32>
      %31 = vector.broadcast %20 : vector<16x1xf32> to vector<16x512xf32>
      %32 = arith.subf %6, %31 : vector<16x512xf32>
      %33 = vector.broadcast %30 : vector<16x1xf32> to vector<16x512xf32>
      %34 = arith.mulf %32, %33 : vector<16x512xf32>
      %c0_22 = arith.constant 0 : index
      %c0_23 = arith.constant 0 : index
      %35 = vector.load %arg7[%c0_22, %c0_23] : memref<16x1xf32, #tpu.memory_space<vmem>>, vector<16x1xf32>
      %36 = vector.broadcast %35 : vector<16x1xf32> to vector<16x512xf32>
      %37 = arith.addf %34, %36 : vector<16x512xf32>
      %cst_24 = arith.constant 0.000000e+00 : f32
      %38 = vector.broadcast %cst_24 : f32 to vector<16x512xf32>
      %39 = arith.maximumf %37, %38 : vector<16x512xf32>
      %c0_25 = arith.constant 0 : index
      %c0_26 = arith.constant 0 : index
      %40 = vector.load %arg8[%c0_25, %c0_26] : memref<16x512xf32, #tpu.memory_space<vmem>>, vector<16x512xf32>
      tpu.vector_store %arg8[%c0_25, %c0_26], %39 {strides = array<i32>} : memref<16x512xf32, #tpu.memory_space<vmem>>, vector<16x512xf32>,
    } else {
    }
    return
  }
  func.func @transform_0(%arg0: i32, %arg1: i32) -> (i32, i32) {
    %c0_i32 = arith.constant 0 : i32
    %c0_i32_0 = arith.constant 0 : i32
    return %c0_i32, %arg1 : i32, i32
  }
  func.func @transform_1(%arg0: i32, %arg1: i32) -> (i32, i32) {
    %c0_i32 = arith.constant 0 : i32
    %c0_i32_0 = arith.constant 0 : i32
    return %c0_i32, %arg1 : i32, i32
  }
  func.func @transform_2(%arg0: i32, %arg1: i32) -> (i32, i32) {
    %c0_i32 = arith.constant 0 : i32
    %c0_i32_0 = arith.constant 0 : i32
    %c0_i32_1 = arith.constant 0 : i32
    return %c0_i32, %c0_i32_0 : i32, i32
  }
  func.func @transform_3(%arg0: i32, %arg1: i32) -> (i32, i32) {
    %c0_i32 = arith.constant 0 : i32
    %c0_i32_0 = arith.constant 0 : i32
    %c0_i32_1 = arith.constant 0 : i32
    return %c0_i32, %c0_i32_0 : i32, i32
  }
  func.func @transform_4(%arg0: i32, %arg1: i32) -> (i32, i32) {
    %c0_i32 = arith.constant 0 : i32
    %c0_i32_0 = arith.constant 0 : i32
    %c0_i32_1 = arith.constant 0 : i32
    return %c0_i32, %c0_i32_0 : i32, i32
  }
  func.func @transform_5(%arg0: i32, %arg1: i32) -> (i32, i32) {
    %c0_i32 = arith.constant 0 : i32
    %c0_i32_0 = arith.constant 0 : i32
    %c0_i32_1 = arith.constant 0 : i32
    return %c0_i32, %c0_i32_0 : i32, i32
  }
  func.func @transform_6(%arg0: i32, %arg1: i32) -> (i32, i32) {
    %0 = arith.muli %arg1, %arg0 : i32
    %c0_i32 = arith.constant 0 : i32
    %c0_i32_0 = arith.constant 0 : i32
    return %c0_i32, %0 : i32, i32
  }
}

</mosaic_0001>

<bundles_post_ra>
// kernel: tpu_custom_call.1
= control target key start
LH: loop header
LB: loop body
LE: loop exit
PB: predicated region body
PF: predicated region fallthrough
CT: control target
= control target key end

     0   :  { %11 = vsyncpa [#allocation5], 0  ;;  %s1137_s0 = inlined_call_operand.vmem [shape: f32[4,512], index: 0, kind: input, shape index: {}]   ;;  %s1138_s1 = inlined_call_operand.vmem [shape: f32[4,512], index: 1, kind: input, shape index: {}]   ;;  %s1139_s2 = inlined_call_operand.vmem [shape: f32[16,4], index: 2, kind: input, shape index: {}]   ;;  %s1140_s3 = inlined_call_operand.vmem [shape: f32[16,4], index: 3, kind: input, shape index: {}]   ;;  %s1141_s4 = inlined_call_operand.vmem [shape: f32[16,1], index: 4, kind: input, shape index: {}]   ;;  %s1142_s5 = inlined_call_operand.vmem [shape: f32[16,1], index: 5, kind: input, shape index: {}]   ;;  %s1143_s6 = inlined_call_operand.hbm [shape: f32[16,512], index: 6, kind: output, shape index: {}]  }
   0x1   :  { %13 = vsyncpa [#allocation5 + $0x1], 0  ;;  %s985_s21 = smov 0   ;;  %s987_s22 = smov 0  }
   0x2   :  { %s989_s23 = smov 0  }
   0x3 LB: > { %s804_s24 = sadd.s32 4294967295, %s943_s23   ;;  %s805_s25 = sadd.s32 4294967294, %s943_s23   ;;  %s943_s23 = sphi %s989_s23, %s19_s23   ;;  %s939_s22 = sphi %s987_s22, %s1145_s22   ;;  %s935_s21 = sphi %s985_s21, %s1144_s21  }
   0x4   : > { %s31_s26 = sadd.s32 1, %s939_s22  ;;  %p809_p0 = scmp.ge.s32.totalorder %s943_s23, 1 }
   0x5   : > { %p33_p1 = scmp.ge.s32.totalorder %s31_s26, 2  ;;  %p241_p2 = scmp.lt.s32.totalorder %s943_s23, 3 }
   0x7   : > { %s1147_s26 = smov (%p33_p1, %s31_s26), 0  ;;  %p242_p3 = pnand %p809_p0, %p241_p2 }
   0x8   : > { %p530_p4 = scmp.eq.s32.totalorder (!%p242_p3), %s935_s21, 0 }
   0x9   : > { %245 = sbr.rel (%p242_p3) target bundleno = 499 (0x1f3), region = 44 }
   0xe   : > { %v296_v0 = vld [vmem:[%s1138_s1] sm:$0xff]  ;;  %v297_v1 = vld [vmem:[%s1138_s1 + $0x8] sm:$0xff]  ;;  %vm314_vm0 = vcmask 1043456   ;;  %vm307_vm1 = vcmask 31744   ;;  %vm536_vm2 = vcmask (%p530_p4), 7168   ;;  %v945_v40 = vmov (%p530_p4), 0.0  }
   0xf   : > { %300 = vst [vmem:[#allocation1] ss:$2 sm:$0xff] %v296_v0  ;;  %v292_v2 = vld [vmem:[%s1137_s0] sm:$0xff]  ;;  %v293_v3 = vld [vmem:[%s1137_s0 + $0x8] sm:$0xff] }
  0x10   : > { %302 = vst [vmem:[#allocation1 + $0x10] ss:$2 sm:$0xff] %v297_v1  ;;  %v294_v4 = vld [vmem:[%s1140_s3] sm:$0xff]  ;;  %v295_v9 = vld [vmem:[%s1140_s3 + $0x8] sm:$0xff] }
  0x11   : > { %v290_v14 = vld [vmem:[%s1139_s2] sm:$0xff]  ;;  %v291_v15 = vld [vmem:[%s1139_s2 + $0x8] sm:$0xff]  ;;  %537 = vst.msk [vmem:[#allocation2] sm:$0xff] (%p530_p4), %vm536_vm2, %v945_v40 }
  0x12   : > { %538 = vst.msk [vmem:[#allocation2 + $0x8] sm:$0xff] (%p530_p4), %vm536_vm2, %v945_v40 }
  0x13   : > { %539 = vst.msk [vmem:[#allocation3] sm:$0xff] (%p530_p4), %vm536_vm2, %v945_v40 }
  0x14   : > { %540 = vst.msk [vmem:[#allocation3 + $0x8] sm:$0xff] (%p530_p4), %vm536_vm2, %v945_v40 }
  0x16   : > { %v303_v5 = vld.sshfl [vmem:[#allocation1] sm:$0xff pattern:$0x75316420]  ;;  %v304_v6 = vld.sshfl [vmem:[#allocation1 + $0x8] sm:$0xff pattern:$0x75316420] }
  0x17   : > { %810 = vmatpush.msk.msra.mxu0 %vm314_vm0, %v303_v5  ;;  %813 = vmatpush.msk.msra.mxu1 %vm314_vm0, %v304_v6  ;;  %417 = vst [vmem:[#allocation1] ss:$2 sm:$0xff] %v292_v2  ;;  %v305_v7 = vld.sshfl [vmem:[#allocation1 + $0x10] sm:$0xff pattern:$0x75316420] }
  0x18   : > { %816 = vmatpush.msk.msra.mxu2 %vm314_vm0, %v305_v7  ;;  %v306_v8 = vld.sshfl [vmem:[#allocation1 + $0x18] sm:$0xff pattern:$0x75316420]  ;;  %811 = vmatmul.msk.f32.vlgmr.msra.gmra.mxu0 %vm307_vm1, %v294_v4 }
  0x19   : > { %819 = vmatpush.msk.msra.mxu3 %vm314_vm0, %v306_v8  ;;  %419 = vst [vmem:[#allocation1 + $0x10] ss:$2 sm:$0xff] %v293_v3  ;;  %814 = vmatmul.msk.f32.vlgmr.msra.gmra.mxu1 %vm307_vm1, %v294_v4 }
  0x1a   : > { %817 = vmatmul.msk.f32.vlgmr.msra.gmra.mxu2 %vm307_vm1, %v294_v4  ;;  %820 = vmatmul.msk.f32.vlgmr.msra.gmra.mxu3 %vm307_vm1, %v294_v4 }
  0x1e   : > { %v420_v10 = vld.sshfl [vmem:[#allocation1] sm:$0xff pattern:$0x75316420]  ;;  %v421_v11 = vld.sshfl [vmem:[#allocation1 + $0x8] sm:$0xff pattern:$0x75316420] }
  0x1f   : > { %822 = vmatpush.msk.msrb.mxu0 %vm314_vm0, %v420_v10  ;;  %825 = vmatpush.msk.msrb.mxu1 %vm314_vm0, %v421_v11 }
  0x20   : > { %v422_v12 = vld.sshfl [vmem:[#allocation1 + $0x10] sm:$0xff pattern:$0x75316420]  ;;  %v423_v13 = vld.sshfl [vmem:[#allocation1 + $0x18] sm:$0xff pattern:$0x75316420]  ;;  %812 = vmatmul.msk.f32.gmra.mxu0 %vm307_vm1, %v295_v9 }
  0x21   : > { %828 = vmatpush.msk.msrb.mxu2 %vm314_vm0, %v422_v12  ;;  %831 = vmatpush.msk.msrb.mxu3 %vm314_vm0, %v423_v13 }
  0x22   : > { %815 = vmatmul.msk.f32.gmra.mxu1 %vm307_vm1, %v295_v9  ;;  %818 = vmatmul.msk.f32.gmra.mxu2 %vm307_vm1, %v295_v9 }
  0x23   : > { %821 = vmatmul.msk.f32.gmra.mxu3 %vm307_vm1, %v295_v9 }
  0x28   : > { %823 = vmatmul.msk.f32.vlgmr.msrb.gmra.mxu0 %vm307_vm1, %v290_v14 }
  0x2a   : > { %826 = vmatmul.msk.f32.vlgmr.msrb.gmra.mxu1 %vm307_vm1, %v290_v14  ;;  %829 = vmatmul.msk.f32.vlgmr.msrb.gmra.mxu2 %vm307_vm1, %v290_v14 }
  0x2b   : > { %832 = vmatmul.msk.f32.vlgmr.msrb.gmra.mxu3 %vm307_vm1, %v290_v14 }
  0x30   : > { %824 = vmatmul.msk.f32.gmra.mxu0 %vm307_vm1, %v291_v15 }
  0x32   : > { %827 = vmatmul.msk.f32.gmra.mxu1 %vm307_vm1, %v291_v15  ;;  %830 = vmatmul.msk.f32.gmra.mxu2 %vm307_vm1, %v291_v15 }
  0x33   : > { %833 = vmatmul.msk.f32.gmra.mxu3 %vm307_vm1, %v291_v15 }
  0x95   : > { %v340_v16 = vpop.f32.mrf.mxu0 }
  0x96   : > { %v363_v17 = vpop.f32.mrf.mxu1 }
  0x9d   : > { %v386_v18 = vpop.f32.mrf.mxu2  ;;  %v409_v19 = vpop.f32.mrf.mxu3 }
  0x9e   : > { %v343_v20 = vpop.f32.mrf.mxu0 }
  0x9f   : > { %v366_v21 = vpop.f32.mrf.mxu1 }
  0xa5   : > { %v389_v22 = vpop.f32.mrf.mxu2 }
  0xa6   : > { %v412_v23 = vpop.f32.mrf.mxu3  ;;  %v455_v24 = vpop.f32.mrf.mxu0 }
  0xa7   : > { %v1056_v25 = vadd.f32 %v455_v24, %v340_v16  ;;  %v478_v26 = vpop.f32.mrf.mxu1 }
  0xa8   : > { %v1058_v27 = vadd.f32 %v478_v26, %v363_v17 }
  0xad   : > { %v501_v28 = vpop.f32.mrf.mxu2 }
  0xae   : > { %v1060_v29 = vadd.f32 %v501_v28, %v386_v18  ;;  %v524_v30 = vpop.f32.mrf.mxu3  ;;  %v458_v31 = vpop.f32.mrf.mxu0 }
  0xaf   : > { %v1062_v32 = vadd.f32 %v524_v30, %v409_v19  ;;  %v1064_v33 = vadd.f32 %v458_v31, %v343_v20  ;;  %v481_v34 = vpop.f32.mrf.mxu1 }
  0xb0   : > { %v1066_v35 = vadd.f32 %v481_v34, %v366_v21 }
  0xb3   : > { %535 = sbr.rel (!%p530_p4) target bundleno = 184 (0xb8), region = 48 }
  0xb5   : > { %v504_v36 = vpop.f32.mrf.mxu2 }
  0xb6   : > { %v1068_v37 = vadd.f32 %v504_v36, %v389_v22  ;;  %v527_v38 = vpop.f32.mrf.mxu3 }
  0xb7   : > { %v1070_v39 = vadd.f32 %v527_v38, %v412_v23 }
  0xb8 PF: > { %p835_p5 = scmp.ne.s32.totalorder %s935_s21, 0 }
  0xba   : > { %543 = sbr.rel (%p835_p5) target bundleno = 326 (0x146), region = 52 }
  0xbf   : > { %v563_v41 = vmul.f32 %v1056_v25, %v1056_v25  ;;  %v564_v42 = vmul.f32 %v1058_v27, %v1058_v27  ;;  %v565_v43 = vmul.f32 %v1060_v29, %v1060_v29  ;;  %v546_v44 = vadd.f32 %v1058_v27, %v1056_v25  ;;  %v544_v61 = vld [vmem:[#allocation2] sm:$0xff]  ;;  %v561_v62 = vld [vmem:[#allocation3] sm:$0xff]  ;;  %v545_v3 = vld [vmem:[#allocation2 + $0x8] sm:$0xff] }
  0xc0   : > { %v567_v45 = vmul.f32 %v1064_v33, %v1064_v33  ;;  %v568_v46 = vmul.f32 %v1066_v35, %v1066_v35  ;;  %v566_v47 = vmul.f32 %v1062_v32, %v1062_v32  ;;  %v551_v50 = vadd.f32 %v1066_v35, %v1064_v33  ;;  %v562_v4 = vld [vmem:[#allocation3 + $0x8] sm:$0xff] }
  0xc1   : > { %v571_v48 = vadd.f32 %v564_v42, %v563_v41  ;;  %v547_v49 = vadd.f32 %v546_v44, %v1060_v29  ;;  %v569_v52 = vmul.f32 %v1068_v37, %v1068_v37  ;;  %v570_v57 = vmul.f32 %v1070_v39, %v1070_v39 }
  0xc2   : > { %v576_v53 = vadd.f32 %v568_v46, %v567_v45  ;;  %v552_v56 = vadd.f32 %v551_v50, %v1068_v37  ;;  %vm558_vm3 = vcmask 7168  }
  0xc3   : > { %v572_v51 = vadd.f32 %v571_v48, %v565_v43  ;;  %v548_v54 = vadd.f32 %v547_v49, %v1062_v32 }
  0xc4   : > { %v577_v58 = vadd.f32 %v576_v53, %v569_v52  ;;  %v553_v59 = vadd.f32 %v552_v56, %v1070_v39 }
  0xc5   : > { %v573_v55 = vadd.f32 %v572_v51, %v566_v47  ;;  %549 = vadd.xlane.f32.xlu0 %v548_v54 }
  0xc6   : > { %v578_v60 = vadd.f32 %v577_v58, %v570_v57 }
  0xc7   : > { %574 = vadd.xlane.f32.xlu1 %v573_v55 }
  0xcd   : > { %554 = vadd.xlane.f32.xlu0 %v553_v59 }
  0xcf   : > { %579 = vadd.xlane.f32.xlu1 %v578_v60 }
 0x138   : > { %v550_v63 = vpop.xlane.xlu0 %549 }
 0x139   : > { %v556_v1 = vadd.f32 %v550_v63, %v544_v61 }
 0x13a   : > { %v575_v0 = vpop.xlane.xlu1 %574 }
 0x13b   : > { %v581_v2 = vadd.f32 %v575_v0, %v561_v62  ;;  %559 = vst.msk [vmem:[#allocation2] sm:$0xff] %vm558_vm3, %v556_v1 }
 0x13d   : > { %583 = vst.msk [vmem:[#allocation3] sm:$0xff] %vm558_vm3, %v581_v2 }
 0x140   : > { %v555_v5 = vpop.xlane.xlu0 %554 }
 0x141   : > { %v557_v7 = vadd.f32 %v555_v5, %v545_v3 }
 0x142   : > { %v580_v6 = vpop.xlane.xlu1 %579 }
 0x143   : > { %v582_v8 = vadd.f32 %v580_v6, %v562_v4  ;;  %560 = vst.msk [vmem:[#allocation2 + $0x8] sm:$0xff] %vm558_vm3, %v557_v7 }
 0x145   : > { %584 = vst.msk [vmem:[#allocation3 + $0x8] sm:$0xff] %vm558_vm3, %v582_v8 }
 0x146 PF: > { %p836_p6 = scmp.ne.s32.totalorder %s935_s21, 1 }
 0x148   : > { %588 = sbr.rel (%p836_p6) target bundleno = 495 (0x1ef), region = 56 }
 0x14d   : > { %v589_v9 = vld [vmem:[#allocation2] sm:$0xff]  ;;  %v593_v10 = vld [vmem:[#allocation3] sm:$0xff]  ;;  %v590_v11 = vld [vmem:[#allocation2 + $0x8] sm:$0xff]  ;;  %v946_v12 = vmov 0  }
 0x14e   : > { %882 = vset.pattern.permute.xlu0 %v946_v12  ;;  %v591_v13 = vmul.f32 0.001953125, %v589_v9  ;;  %v595_v14 = vmul.f32 0.001953125, %v593_v10  ;;  %v592_v15 = vmul.f32 0.001953125, %v590_v11  ;;  %v594_v16 = vld [vmem:[#allocation3 + $0x8] sm:$0xff]  ;;  %883 = vset.pattern.permute.xlu1 %v946_v12  ;;  %v664_v26 = vld [vmem:[%s1142_s5 + $0x8] sm:$0xff] }
 0x14f   : > { %v596_v17 = vmul.f32 0.001953125, %v594_v16  ;;  %884 = vset.pattern.permute.xlu2 %v946_v12  ;;  %v663_v22 = vld [vmem:[%s1142_s5] sm:$0xff]  ;;  %v624_v50 = vld [vmem:[%s1141_s4 + $0x8] sm:$0xff] }
 0x150   : > { %629 = vperm.xlu0 %882, %v591_v13   ;;  %v597_v18 = vmul.f32 %v591_v13, %v591_v13  ;;  %v598_v19 = vmul.f32 %v592_v15, %v592_v15  ;;  %667 = vperm.xlu2 %884, %v663_v22   ;;  %v623_v45 = vld [vmem:[%s1141_s4] sm:$0xff] }
 0x152   : > { %v599_v20 = vsub.f32 %v595_v14, %v597_v18  ;;  %v600_v21 = vsub.f32 %v596_v17, %v598_v19 }
 0x154   : > { %v601_v23 = vadd.f32 1e-05, %v599_v20  ;;  %v602_v24 = vadd.f32 1e-05, %v600_v21 }
 0x156   : > { %885 = vrsqrt.f32 %v601_v23  ;;  %vm609_vm4 = vweird.f32 %v601_v23  ;;  %vm619_vm7 = vweird.f32 %v602_v24 }
 0x157   : > { %887 = vrsqrt.f32 %v602_v24 }
 0x158   : > { %634 = vperm.xlu0 %882, %v592_v15   ;;  %672 = vperm.xlu2 %884, %v664_v26  }
 0x15c   : > { %v886_v28 = vpop.eup %885 }
 0x15d   : > { %v888_v30 = vpop.eup %887  ;;  %v604_v31 = vmul.f32 %v886_v28, %v601_v23  ;;  %vm610_vm5 = vweird.f32 %v886_v28 }
 0x15e   : > { %v614_v34 = vmul.f32 %v888_v30, %v602_v24  ;;  %vm611_vm6 = vmor %vm609_vm4, %vm610_vm5  ;;  %vm620_vm8 = vweird.f32 %v888_v30 }
 0x15f   : > { %v605_v36 = vmul.f32 %v886_v28, %v604_v31  ;;  %vm621_vm9 = vmor %vm619_vm7, %vm620_vm8 }
 0x160   : > { %v615_v38 = vmul.f32 %v888_v30, %v614_v34 }
 0x161   : > { %v606_v40 = vmul.f32 0.5, %v605_v36 }
 0x162   : > { %v616_v41 = vmul.f32 0.5, %v615_v38 }
 0x163   : > { %v607_v42 = vsub.f32 1.5, %v606_v40 }
 0x164   : > { %v617_v43 = vsub.f32 1.5, %v616_v41 }
 0x165   : > { %v608_v44 = vmul.f32 %v886_v28, %v607_v42 }
 0x166   : > { %v618_v47 = vmul.f32 %v888_v30, %v617_v43 }
 0x167   : > { %v612_v46 = vsel %vm611_vm6, %v886_v28, %v608_v44 }
 0x168   : > { %v625_v48 = vmul.f32 %v623_v45, %v612_v46  ;;  %v622_v49 = vsel %vm621_vm9, %v888_v30, %v618_v47 }
 0x169   : > { %v626_v51 = vmul.f32 %v624_v50, %v622_v49 }
 0x16a   : > { %647 = vperm.xlu1 %883, %v625_v48  }
 0x172   : > { %652 = vperm.xlu1 %883, %v626_v51  }
 0x1aa   : > { %v668_v57 = vpop.permute.xlu2 %667 }
 0x1b2   : > { %v673_v13 = vpop.permute.xlu2 %672 }
 0x1c2   : > { %v630_v52 = vpop.permute.xlu0 %629 }
 0x1c3   : > { %v637_v53 = vsub.f32 %v1056_v25, %v630_v52  ;;  %v638_v54 = vsub.f32 %v1058_v27, %v630_v52  ;;  %v639_v55 = vsub.f32 %v1060_v29, %v630_v52  ;;  %v640_v56 = vsub.f32 %v1062_v32, %v630_v52 }
 0x1ca   : > { %v635_v3 = vpop.permute.xlu0 %634 }
 0x1cb   : > { %v641_v27 = vsub.f32 %v1064_v33, %v635_v3  ;;  %v642_v29 = vsub.f32 %v1066_v35, %v635_v3  ;;  %v643_v32 = vsub.f32 %v1068_v37, %v635_v3  ;;  %v644_v7 = vsub.f32 %v1070_v39, %v635_v3 }
 0x1dc   : > { %v648_v58 = vpop.permute.xlu1 %647 }
 0x1dd   : > { %v655_v59 = vmul.f32 %v648_v58, %v637_v53  ;;  %v656_v60 = vmul.f32 %v648_v58, %v638_v54  ;;  %v657_v61 = vmul.f32 %v648_v58, %v639_v55  ;;  %v658_v62 = vmul.f32 %v648_v58, %v640_v56 }
 0x1df   : > { %v675_v63 = vadd.f32 %v668_v57, %v655_v59  ;;  %v676_v0 = vadd.f32 %v668_v57, %v656_v60  ;;  %v677_v1 = vadd.f32 %v668_v57, %v657_v61  ;;  %v678_v2 = vadd.f32 %v668_v57, %v658_v62 }
 0x1e1   : > { %v683_v4 = vmax.f32 %v675_v63, 0.0  ;;  %v684_v5 = vmax.f32 %v676_v0, 0.0  ;;  %v685_v25 = vmax.f32 %v677_v1, 0.0  ;;  %v686_v6 = vmax.f32 %v678_v2, 0.0 }
 0x1e3   : > { %691 = vst [vmem:[#allocation4] sm:$0xff] %v683_v4 }
 0x1e4   : > { %692 = vst [vmem:[#allocation4 + $0x8] sm:$0xff] %v684_v5  ;;  %v653_v8 = vpop.permute.xlu1 %652 }
 0x1e5   : > { %693 = vst [vmem:[#allocation4 + $0x10] sm:$0xff] %v685_v25  ;;  %v659_v9 = vmul.f32 %v653_v8, %v641_v27  ;;  %v660_v10 = vmul.f32 %v653_v8, %v642_v29  ;;  %v661_v11 = vmul.f32 %v653_v8, %v643_v32  ;;  %v662_v12 = vmul.f32 %v653_v8, %v644_v7 }
 0x1e6   : > { %694 = vst [vmem:[#allocation4 + $0x18] sm:$0xff] %v686_v6 }
 0x1e7   : > { %v679_v14 = vadd.f32 %v673_v13, %v659_v9  ;;  %v680_v15 = vadd.f32 %v673_v13, %v660_v10  ;;  %v681_v16 = vadd.f32 %v673_v13, %v661_v11  ;;  %v682_v33 = vadd.f32 %v673_v13, %v662_v12 }
 0x1e9   : > { %v687_v17 = vmax.f32 %v679_v14, 0.0  ;;  %v688_v35 = vmax.f32 %v680_v15, 0.0  ;;  %v689_v18 = vmax.f32 %v681_v16, 0.0  ;;  %v690_v37 = vmax.f32 %v682_v33, 0.0 }
 0x1eb   : > { %695 = vst [vmem:[#allocation4 + $0x20] sm:$0xff] %v687_v17 }
 0x1ec   : > { %696 = vst [vmem:[#allocation4 + $0x28] sm:$0xff] %v688_v35 }
 0x1ed   : > { %697 = vst [vmem:[#allocation4 + $0x30] sm:$0xff] %v689_v18 }
 0x1ee   : > { %698 = vst [vmem:[#allocation4 + $0x38] sm:$0xff] %v690_v37 }
 0x1ef PF: > { %p850_p7 = scmp.eq.s32.totalorder %s804_s24, 1  ;;  %s715_s10 = sshll.u32 %s1143_s6, 4  ;;  %s716_s10 = int_to_ptr.hbm [resolvable:$true] %s715_s10 }
 0x1f0   : > { %s947_s11 = smov [#allocation4]   ;;  %s948_s13 = smov 512  }
 0x1f1   : > { %s713_s12 = sshll.u32 %s947_s11, 4  ;;  %s949_s14 = smov 32   ;;  %s714_s12 = int_to_ptr.vmem [resolvable:$true] %s713_s12 }
 0x1f2   : > { %843 = dma.vmem_to_hbm [thread:$0]  (%p850_p7), %s714_s12, 1024, %s716_s10, [#allocation5], %s948_s13, %s948_s13, %s949_s14  }
 0x1f3 PF: > { %p851_p8 = scmp.ge.s32.totalorder %s943_s23, 2  ;;  %p852_p9 = scmp.eq.s32.totalorder %s805_s25, 1 }
 0x1f5   : > { %p847_p10 = pnand %p852_p9, %p851_p8 }
 0x1f7   : > { %p848_p11 = pneg %p847_p10 }
 0x1f9   : > { %930 = dma.done.wait (%p848_p11), [#allocation5], 1024  }
 0x1fa   : > { %932 = vsyncadd (%p848_p11), [#allocation5], 4294966272  ;;  %s19_s23 = sadd.s32 1, %s943_s23   ;;  %s1144_s21 = smov %s939_s22 }
 0x1fb   : > { %p16_p12 = scmp.ge.s32.totalorder %s19_s23, 4   ;;  %s1145_s22 = smov %s1147_s26 }
 0x1fd   :  { %18 = sbr.rel (!%p16_p12) target bundleno = 3 (0x3), region = 96 }
 0x202   :  { %737 = vsyncpa [#allocation5], 1 }
 0x203   :  { %739 = vsyncpa [#allocation5 + $0x1], 1 }

</bundles_post_ra>
